<compile_context>
chip_gen: v7x
topology: tpu7x:2x2x1
jax: 0.10.0
libtpu: 0.0.40
codegen_flags: <defaults>
</compile_context>

<pallas_src>
import jax
import jax.numpy as jnp
from jax.experimental import pallas as pl
from jax.experimental.pallas import tpu as pltpu


def _round_up(n: int, m: int) -> int:
    return ((n + m - 1) // m) * m


# --------------------------------------------------------------- kernels ----

def _model_kernel(x_ref, w1_ref, b1_ref, w2_ref, b2_ref, z_ref, y_ref):
    # converter: y = x @ W1_t + b1   (W1_t pre-transposed [d_in, d_hid_p], bf16)
    x = x_ref[...].astype(w1_ref.dtype)                       # bf16 MXU operand
    y_f32 = jnp.dot(x, w1_ref[...], preferred_element_type=jnp.float32)
    y_f32 = y_f32 + b1_ref[...]                               # f32 VPU add
    # suffix: z = y @ W2_t + b2 (bf16 operands, f32 accumulation)
    z_f32 = jnp.dot(y_f32.astype(w2_ref.dtype), w2_ref[...],
                    preferred_element_type=jnp.float32)
    z_f32 = z_f32 + b2_ref[...]
    # _Model.forward returns (suffix(y), y). Store TRUE widths directly (only
    # the tail vreg store is masked); avoids a post-kernel slice pass over HBM.
    z_ref[...] = z_f32[:, :z_ref.shape[1]].astype(z_ref.dtype)
    y_ref[...] = y_f32[:, :y_ref.shape[1]].astype(y_ref.dtype)


def _model_kernel_ktiled(x_ref, w1_ref, b1_ref, w2_ref, b2_ref,
                         z_ref, y_ref, acc_ref):
    # Fallback when resident weights don't fit VMEM: grid=(batch tiles, d_hid
    # tiles); z is accumulated in an f32 scratch across the d_hid axis.
    k = pl.program_id(1)

    @pl.when(k == 0)
    def _():
        acc_ref[...] = jnp.zeros_like(acc_ref)

    x = x_ref[...].astype(w1_ref.dtype)
    y_f32 = jnp.dot(x, w1_ref[...], preferred_element_type=jnp.float32)
    y_f32 = y_f32 + b1_ref[...]
    acc_ref[...] += jnp.dot(y_f32.astype(w2_ref.dtype), w2_ref[...],
                            preferred_element_type=jnp.float32)
    y_ref[...] = y_f32[:, :y_ref.shape[1]].astype(y_ref.dtype)

    @pl.when(k == pl.num_programs(1) - 1)
    def _():
        z_f32 = acc_ref[...] + b2_ref[...]
        z_ref[...] = z_f32[:, :z_ref.shape[1]].astype(z_ref.dtype)


# ------------------------------------------------------------ param packing --

def prepare_params(w1, b1, w2, b2, compute_dtype=jnp.bfloat16):
    """One-time (model-init) packing of torch.nn.Linear params.

    w1: [D_HID, D_IN], b1: [D_HID], w2: [D_OUT, D_HID], b2: [D_OUT]
    Weights are transposed to [in, out], cast to `compute_dtype`, and
    lane-padded to multiples of 128 (padded rows/cols are zero, so they do not
    contaminate results). Biases are kept in f32.
    Note: d_in is kept as-is; for small/odd d_in, pad x upstream to a multiple
    of 16 (bf16 sublane) to better fill the MXU K dimension.
    """
    d_hid, d_in = w1.shape
    d_out = w2.shape[0]
    d_hid_p = _round_up(d_hid, 128)
    d_out_p = _round_up(d_out, 128)

    w1_t = jnp.zeros((d_in, d_hid_p), compute_dtype)
    w1_t = w1_t.at[:, :d_hid].set(w1.T.astype(compute_dtype))
    b1_r = jnp.zeros((1, d_hid_p), jnp.float32)
    b1_r = b1_r.at[0, :d_hid].set(b1.astype(jnp.float32))

    w2_t = jnp.zeros((d_hid_p, d_out_p), compute_dtype)
    w2_t = w2_t.at[:d_hid, :d_out].set(w2.T.astype(compute_dtype))
    b2_r = jnp.zeros((1, d_out_p), jnp.float32)
    b2_r = b2_r.at[0, :d_out].set(b2.astype(jnp.float32))

    return {"w1_t": w1_t, "b1": b1_r, "w2_t": w2_t, "b2": b2_r,
            "d_hid": d_hid, "d_out": d_out}


# ---------------------------------------------------------------- forward ----

def model_forward(x, params, *, tm=512, out_dtype=None):
    """Pallas equivalent of _Model(Linear, Linear).forward(x) -> (z, y)."""
    B, d_in = x.shape
    w1_t, b1_r = params["w1_t"], params["b1"]
    w2_t, b2_r = params["w2_t"], params["b2"]
    d_hid, d_out = params["d_hid"], params["d_out"]
    d_hid_p, d_out_p = w1_t.shape[1], w2_t.shape[1]

    out_dtype = jnp.dtype(x.dtype if out_dtype is None else out_dtype)
    x_item = jnp.dtype(x.dtype).itemsize
    o_item = out_dtype.itemsize
    w_item = jnp.dtype(w1_t.dtype).itemsize
    w_bytes = (w1_t.size + w2_t.size) * w_item + (b1_r.size + b2_r.size) * 4

    # ---- generation-aware VMEM budget (v7x: 64 MiB/TC, v6e/v5e: 128 MiB) ----
    try:
        vmem_cap = int(getattr(pltpu.get_tpu_info(), "vmem_capacity_bytes",
                               64 << 20))
    except Exception:
        vmem_cap = 64 << 20          # conservative default: v7x per-TC VMEM
    budget = max(32 << 20, vmem_cap - (16 << 20))
    vmem_cap_limit = max(32 << 20, vmem_cap - (8 << 20))

    def clamp(t):
        t = min(t, B)
        if t >= B:
            return B                 # full-extent block is always legal
        return max(8, (t // 8) * 8)  # second-to-last block dim must be 8-aligned

    # Resident-weight path VMEM: single-buffered weights, double-buffered
    # streamed tiles, plus in-kernel temporaries (bf16 x, f32 y, bf16 y, f32 z).
    def resident_bytes(t):
        stream = 2 * t * (d_in * x_item + (d_hid + d_out) * o_item)
        temps = t * (2 * d_in + 6 * d_hid_p + 4 * d_out_p)
        return stream + temps + w_bytes

    tm = clamp(tm)
    min_tm = clamp(128)
    while tm > min_tm and resident_bytes(tm) > budget:
        tm = clamp(max(min_tm, tm // 2))

    # Guarantee >=2 (pref >=4) grid steps so ("parallel",) shards across v7x's
    # two TensorCores and the pipeline can overlap DMA with compute.
    while pl.cdiv(B, tm) < 2 and B >= 16 and tm >= 16:
        new_tm = clamp(tm // 2)
        if new_tm == tm:
            break
        tm = new_tm
    while pl.cdiv(B, tm) < 4 and tm >= 512:
        tm = clamp(tm // 2)

    cost = pl.CostEstimate(
        flops=2 * B * (d_in * d_hid + d_hid * d_out),
        transcendentals=0,
        bytes_accessed=B * d_in * x_item + B * (d_hid + d_out) * o_item + w_bytes,
    )
    out_shape = (jax.ShapeDtypeStruct((B, d_out), out_dtype),
                 jax.ShapeDtypeStruct((B, d_hid), out_dtype))

    # ---------------- resident-weight (fast) path ----------------------------
    if resident_bytes(tm) <= budget:

        def run(weight_mode):
            wkw = {} if weight_mode is None else {"pipeline_mode": weight_mode}
            extra = 0 if weight_mode is not None else w_bytes   # dbl-buf slack
            vmem_limit = int(min(max(resident_bytes(tm) + extra + (4 << 20),
                                     32 << 20), vmem_cap_limit))
            return pl.pallas_call(
                _model_kernel,
                out_shape=out_shape,
                grid_spec=pltpu.PrefetchScalarGridSpec(
                    num_scalar_prefetch=0,
                    grid=(pl.cdiv(B, tm),),
                    in_specs=[
                        pl.BlockSpec((tm, d_in), lambda i: (i, 0)),            # x: streamed
                        pl.BlockSpec((d_in, d_hid_p), lambda i: (0, 0), **wkw),   # W1: resident
                        pl.BlockSpec((1, d_hid_p), lambda i: (0, 0), **wkw),      # b1: resident
                        pl.BlockSpec((d_hid_p, d_out_p), lambda i: (0, 0), **wkw),# W2: resident
                        pl.BlockSpec((1, d_out_p), lambda i: (0, 0), **wkw),      # b2: resident
                    ],
                    out_specs=[
                        pl.BlockSpec((tm, d_out), lambda i: (i, 0)),           # z (true width)
                        pl.BlockSpec((tm, d_hid), lambda i: (i, 0)),           # y (true width)
                    ],
                ),
                compiler_params=pltpu.CompilerParams(
                    dimension_semantics=("parallel",),
                    vmem_limit_bytes=vmem_limit,
                ),
                cost_estimate=cost,
            )(x, w1_t, b1_r, w2_t, b2_r)

        try:
            # Constant-index weights need only ONE VMEM buffer (never re-fetched);
            # halving their footprint lets tm stay large on v7x's 64 MiB.
            return run(pl.Buffered(1))
        except Exception:
            # This jax build rejected pipeline_mode on pallas_call BlockSpecs;
            # fall back to default double-buffered resident weights.
            return run(None)

    # ---------------- K-tiled fallback (weights too big to stay resident) ----
    tm = clamp(min(tm, 256))

    def ktiled_bytes(t, k):
        w_slice = 2 * (d_in * k + k * d_out_p) * w_item + 2 * 4 * (k + d_out_p)
        stream = 2 * t * (d_in * x_item + k * o_item + d_out * o_item)
        acc = 4 * t * d_out_p
        temps = t * (2 * d_in + 6 * k + 4 * d_out_p)
        return w_slice + stream + acc + temps

    tk = 128                               # always divides d_hid_p (128-padded)
    for cand in (512, 384, 256, 128):
        if d_hid_p % cand == 0 and ktiled_bytes(tm, cand) <= budget:
            tk = cand
            break
    while tm > min_tm and ktiled_bytes(tm, tk) > budget:
        tm = clamp(max(min_tm, tm // 2))

    vmem_limit = int(min(max(ktiled_bytes(tm, tk) + (4 << 20), 32 << 20),
                         vmem_cap_limit))
    return pl.pallas_call(
        _model_kernel_ktiled,
        out_shape=out_shape,
        grid_spec=pltpu.PrefetchScalarGridSpec(
            num_scalar_prefetch=0,
            grid=(pl.cdiv(B, tm), d_hid_p // tk),
            in_specs=[
                pl.BlockSpec((tm, d_in), lambda i, k: (i, 0)),      # x: held per i
                pl.BlockSpec((d_in, tk), lambda i, k: (0, k)),      # W1 column slab
                pl.BlockSpec((1, tk), lambda i, k: (0, k)),         # b1 slab
                pl.BlockSpec((tk, d_out_p), lambda i, k: (k, 0)),   # W2 row slab
                pl.BlockSpec((1, d_out_p), lambda i, k: (0, 0)),    # b2
            ],
            out_specs=[
                pl.BlockSpec((tm, d_out), lambda i, k: (i, 0)),     # z (accumulated)
                pl.BlockSpec((tm, tk), lambda i, k: (i, k)),        # y slab
            ],
            scratch_shapes=[pltpu.VMEM((tm, d_out_p), jnp.float32)],
        ),
        compiler_params=pltpu.CompilerParams(
            dimension_semantics=("parallel", "arbitrary"),
            vmem_limit_bytes=vmem_limit,
        ),
        cost_estimate=cost,
    )(x, w1_t, b1_r, w2_t, b2_r)


# ------------------------------------------------------------------ demo -----

if __name__ == "__main__":
    B, D_IN, D_HID, D_OUT = 8, 32, 64, 16

    key = jax.random.PRNGKey(0)
    kx, kw1, kb1, kw2, kb2 = jax.random.split(key, 5)

    x = jax.random.normal(kx, (B, D_IN), dtype=jnp.float32)
    # torch.nn.Linear weight layout: [out_features, in_features]
    w1 = jax.random.normal(kw1, (D_HID, D_IN), dtype=jnp.float32) * 0.1
    b1 = jax.random.normal(kb1, (D_HID,), dtype=jnp.float32) * 0.1
    w2 = jax.random.normal(kw2, (D_OUT, D_HID), dtype=jnp.float32) * 0.1
    b2 = jax.random.normal(kb2, (D_OUT,), dtype=jnp.float32) * 0.1

    params = prepare_params(w1, b1, w2, b2)          # one-time packing
    z, y = model_forward(x, params)
    jax.block_until_ready((z, y))

    assert z.shape == (B, D_OUT) and y.shape == (B, D_HID)

    # Reference that mirrors the MXU numerics (bf16 operands, f32 accumulation).
    bf = lambda a: a.astype(jnp.bfloat16).astype(jnp.float32)
    y_ref = bf(x) @ bf(w1.T) + b1
    z_ref = bf(y_ref) @ bf(w2.T) + b2
    assert jnp.allclose(y, y_ref, atol=5e-3, rtol=5e-3)
    assert jnp.allclose(z, z_ref, atol=5e-3, rtol=5e-3)

    # Looser sanity check against the pure-f32 torch semantics.
    y_f32 = x @ w1.T + b1
    z_f32 = y_f32 @ w2.T + b2
    assert jnp.allclose(y, y_f32, atol=5e-2, rtol=5e-2)
    assert jnp.allclose(z, z_f32, atol=5e-2, rtol=5e-2)

    print("KERNEL_OK")
</pallas_src>

<mosaic_0001>
module attributes {stable_mosaic.version = 11 : i64} {
  func.func @_model_kernel(%arg0: i32, %arg1: memref<8x32xf32, #tpu.memory_space<vmem>>, %arg2: memref<32x128xbf16, #tpu.memory_space<vmem>>, %arg3: memref<1x128xf32, #tpu.memory_space<vmem>>, %arg4: memref<128x128xbf16, #tpu.memory_space<vmem>>, %arg5: memref<1x128xf32, #tpu.memory_space<vmem>>, %arg6: memref<8x16xf32, #tpu.memory_space<vmem>>, %arg7: memref<8x64xf32, #tpu.memory_space<vmem>>) attributes {dimension_semantics = [#tpu.dimension_semantics<parallel>], iteration_bounds = array<i64: 1>, scalar_prefetch = 0 : i64, scratch_operands = 0 : i64, tpu.core_type = #tpu.core_type<tc>, window_params = [{transform_indices = @transform_0, window_bounds = array<i64: 8, 32>}, {pipeline_mode = #tpu.pipeline_mode<synchronous>, transform_indices = @transform_1, window_bounds = array<i64: 32, 128>}, {pipeline_mode = #tpu.pipeline_mode<synchronous>, transform_indices = @transform_2, window_bounds = array<i64: 1, 128>}, {pipeline_mode = #tpu.pipeline_mode<synchronous>, transform_indices = @transform_3, window_bounds = array<i64: 128, 128>}, {pipeline_mode = #tpu.pipeline_mode<synchronous>, transform_indices = @transform_4, window_bounds = array<i64: 1, 128>}, {transform_indices = @transform_5, window_bounds = array<i64: 8, 16>}, {transform_indices = @transform_6, window_bounds = array<i64: 8, 64>}]} {
    %c0 = arith.constant 0 : index
    %c0_0 = arith.constant 0 : index
    %0 = vector.load %arg1[%c0, %c0_0] : memref<8x32xf32, #tpu.memory_space<vmem>>, vector<8x32xf32>
    %1 = arith.truncf %0 : vector<8x32xf32> to vector<8x32xbf16>
    %c0_1 = arith.constant 0 : index
    %c0_2 = arith.constant 0 : index
    %2 = vector.load %arg2[%c0_1, %c0_2] : memref<32x128xbf16, #tpu.memory_space<vmem>>, vector<32x128xbf16>
    %cst = arith.constant dense<0.000000e+00> : vector<8x128xf32>
    %3 = tpu.matmul %1, %2, %cst {dimension_numbers = #tpu.dot_dimension_numbers<[1], [0], [0], [1], [0, 0, 1, 1], [], []>} : vector<8x32xbf16>, vector<32x128xbf16>, vector<8x128xf32> -> vector<8x128xf32>
    %c0_3 = arith.constant 0 : index
    %c0_4 = arith.constant 0 : index
    %4 = vector.load %arg3[%c0_3, %c0_4] : memref<1x128xf32, #tpu.memory_space<vmem>>, vector<1x128xf32>
    %5 = vector.broadcast %4 : vector<1x128xf32> to vector<8x128xf32>
    %6 = arith.addf %3, %5 : vector<8x128xf32>
    %7 = arith.truncf %6 : vector<8x128xf32> to vector<8x128xbf16>
    %c0_5 = arith.constant 0 : index
    %c0_6 = arith.constant 0 : index
    %8 = vector.load %arg4[%c0_5, %c0_6] : memref<128x128xbf16, #tpu.memory_space<vmem>>, vector<128x128xbf16>
    %cst_7 = arith.constant dense<0.000000e+00> : vector<8x128xf32>
    %9 = tpu.matmul %7, %8, %cst_7 {dimension_numbers = #tpu.dot_dimension_numbers<[1], [0], [0], [1], [0, 0, 1, 1], [], []>} : vector<8x128xbf16>, vector<128x128xbf16>, vector<8x128xf32> -> vector<8x128xf32>
    %c0_8 = arith.constant 0 : index
    %c0_9 = arith.constant 0 : index
    %10 = vector.load %arg5[%c0_8, %c0_9] : memref<1x128xf32, #tpu.memory_space<vmem>>, vector<1x128xf32>
    %11 = vector.broadcast %10 : vector<1x128xf32> to vector<8x128xf32>
    %12 = arith.addf %9, %11 : vector<8x128xf32>
    %13 = vector.extract_strided_slice %12 {offsets = [0, 0], sizes = [8, 16], strides = [1, 1]} : vector<8x128xf32> to vector<8x16xf32>
    %c0_10 = arith.constant 0 : index
    %c0_11 = arith.constant 0 : index
    %14 = vector.load %arg6[%c0_10, %c0_11] : memref<8x16xf32, #tpu.memory_space<vmem>>, vector<8x16xf32>
    tpu.vector_store %arg6[%c0_10, %c0_11], %13 {strides = array<i32>} : memref<8x16xf32, #tpu.memory_space<vmem>>, vector<8x16xf32>,
    %15 = vector.extract_strided_slice %6 {offsets = [0, 0], sizes = [8, 64], strides = [1, 1]} : vector<8x128xf32> to vector<8x64xf32>
    %c0_12 = arith.constant 0 : index
    %c0_13 = arith.constant 0 : index
    %16 = vector.load %arg7[%c0_12, %c0_13] : memref<8x64xf32, #tpu.memory_space<vmem>>, vector<8x64xf32>
    tpu.vector_store %arg7[%c0_12, %c0_13], %15 {strides = array<i32>} : memref<8x64xf32, #tpu.memory_space<vmem>>, vector<8x64xf32>,
    return
  }
  func.func @transform_0(%arg0: i32) -> (i32, i32) {
    %c0_i32 = arith.constant 0 : i32
    %c0_i32_0 = arith.constant 0 : i32
    return %arg0, %c0_i32 : i32, i32
  }
  func.func @transform_1(%arg0: i32) -> (i32, i32) {
    %c0_i32 = arith.constant 0 : i32
    %c0_i32_0 = arith.constant 0 : i32
    %c0_i32_1 = arith.constant 0 : i32
    return %c0_i32, %c0_i32_0 : i32, i32
  }
  func.func @transform_2(%arg0: i32) -> (i32, i32) {
    %c0_i32 = arith.constant 0 : i32
    %c0_i32_0 = arith.constant 0 : i32
    %c0_i32_1 = arith.constant 0 : i32
    return %c0_i32, %c0_i32_0 : i32, i32
  }
  func.func @transform_3(%arg0: i32) -> (i32, i32) {
    %c0_i32 = arith.constant 0 : i32
    %c0_i32_0 = arith.constant 0 : i32
    %c0_i32_1 = arith.constant 0 : i32
    return %c0_i32, %c0_i32_0 : i32, i32
  }
  func.func @transform_4(%arg0: i32) -> (i32, i32) {
    %c0_i32 = arith.constant 0 : i32
    %c0_i32_0 = arith.constant 0 : i32
    %c0_i32_1 = arith.constant 0 : i32
    return %c0_i32, %c0_i32_0 : i32, i32
  }
  func.func @transform_5(%arg0: i32) -> (i32, i32) {
    %c0_i32 = arith.constant 0 : i32
    %c0_i32_0 = arith.constant 0 : i32
    return %arg0, %c0_i32 : i32, i32
  }
  func.func @transform_6(%arg0: i32) -> (i32, i32) {
    %c0_i32 = arith.constant 0 : i32
    %c0_i32_0 = arith.constant 0 : i32
    return %arg0, %c0_i32 : i32, i32
  }
}

module attributes {stable_mosaic.version = 11 : i64} {
  func.func @_model_kernel(%arg0: i32, %arg1: memref<8x32xf32, #tpu.memory_space<vmem>>, %arg2: memref<32x128xbf16, #tpu.memory_space<vmem>>, %arg3: memref<1x128xf32, #tpu.memory_space<vmem>>, %arg4: memref<128x128xbf16, #tpu.memory_space<vmem>>, %arg5: memref<1x128xf32, #tpu.memory_space<vmem>>, %arg6: memref<8x16xf32, #tpu.memory_space<vmem>>, %arg7: memref<8x64xf32, #tpu.memory_space<vmem>>) attributes {dimension_semantics = [#tpu.dimension_semantics<parallel>], iteration_bounds = array<i64: 1>, scalar_prefetch = 0 : i64, scratch_operands = 0 : i64, tpu.core_type = #tpu.core_type<tc>, window_params = [{transform_indices = @transform_0, window_bounds = array<i64: 8, 32>}, {pipeline_mode = #tpu.pipeline_mode<synchronous>, transform_indices = @transform_1, window_bounds = array<i64: 32, 128>}, {pipeline_mode = #tpu.pipeline_mode<synchronous>, transform_indices = @transform_2, window_bounds = array<i64: 1, 128>}, {pipeline_mode = #tpu.pipeline_mode<synchronous>, transform_indices = @transform_3, window_bounds = array<i64: 128, 128>}, {pipeline_mode = #tpu.pipeline_mode<synchronous>, transform_indices = @transform_4, window_bounds = array<i64: 1, 128>}, {transform_indices = @transform_5, window_bounds = array<i64: 8, 16>}, {transform_indices = @transform_6, window_bounds = array<i64: 8, 64>}]} {
    %c0 = arith.constant 0 : index
    %c0_0 = arith.constant 0 : index
    %0 = vector.load %arg1[%c0, %c0_0] : memref<8x32xf32, #tpu.memory_space<vmem>>, vector<8x32xf32>
    %1 = arith.truncf %0 : vector<8x32xf32> to vector<8x32xbf16>
    %c0_1 = arith.constant 0 : index
    %c0_2 = arith.constant 0 : index
    %2 = vector.load %arg2[%c0_1, %c0_2] : memref<32x128xbf16, #tpu.memory_space<vmem>>, vector<32x128xbf16>
    %cst = arith.constant dense<0.000000e+00> : vector<8x128xf32>
    %3 = tpu.matmul %1, %2, %cst {dimension_numbers = #tpu.dot_dimension_numbers<[1], [0], [0], [1], [0, 0, 1, 1], [], []>} : vector<8x32xbf16>, vector<32x128xbf16>, vector<8x128xf32> -> vector<8x128xf32>
    %c0_3 = arith.constant 0 : index
    %c0_4 = arith.constant 0 : index
    %4 = vector.load %arg3[%c0_3, %c0_4] : memref<1x128xf32, #tpu.memory_space<vmem>>, vector<1x128xf32>
    %5 = vector.broadcast %4 : vector<1x128xf32> to vector<8x128xf32>
    %6 = arith.addf %3, %5 : vector<8x128xf32>
    %7 = arith.truncf %6 : vector<8x128xf32> to vector<8x128xbf16>
    %c0_5 = arith.constant 0 : index
    %c0_6 = arith.constant 0 : index
    %8 = vector.load %arg4[%c0_5, %c0_6] : memref<128x128xbf16, #tpu.memory_space<vmem>>, vector<128x128xbf16>
    %cst_7 = arith.constant dense<0.000000e+00> : vector<8x128xf32>
    %9 = tpu.matmul %7, %8, %cst_7 {dimension_numbers = #tpu.dot_dimension_numbers<[1], [0], [0], [1], [0, 0, 1, 1], [], []>} : vector<8x128xbf16>, vector<128x128xbf16>, vector<8x128xf32> -> vector<8x128xf32>
    %c0_8 = arith.constant 0 : index
    %c0_9 = arith.constant 0 : index
    %10 = vector.load %arg5[%c0_8, %c0_9] : memref<1x128xf32, #tpu.memory_space<vmem>>, vector<1x128xf32>
    %11 = vector.broadcast %10 : vector<1x128xf32> to vector<8x128xf32>
    %12 = arith.addf %9, %11 : vector<8x128xf32>
    %13 = vector.extract_strided_slice %12 {offsets = [0, 0], sizes = [8, 16], strides = [1, 1]} : vector<8x128xf32> to vector<8x16xf32>
    %c0_10 = arith.constant 0 : index
    %c0_11 = arith.constant 0 : index
    %14 = vector.load %arg6[%c0_10, %c0_11] : memref<8x16xf32, #tpu.memory_space<vmem>>, vector<8x16xf32>
    tpu.vector_store %arg6[%c0_10, %c0_11], %13 {strides = array<i32>} : memref<8x16xf32, #tpu.memory_space<vmem>>, vector<8x16xf32>,
    %15 = vector.extract_strided_slice %6 {offsets = [0, 0], sizes = [8, 64], strides = [1, 1]} : vector<8x128xf32> to vector<8x64xf32>
    %c0_12 = arith.constant 0 : index
    %c0_13 = arith.constant 0 : index
    %16 = vector.load %arg7[%c0_12, %c0_13] : memref<8x64xf32, #tpu.memory_space<vmem>>, vector<8x64xf32>
    tpu.vector_store %arg7[%c0_12, %c0_13], %15 {strides = array<i32>} : memref<8x64xf32, #tpu.memory_space<vmem>>, vector<8x64xf32>,
    return
  }
  func.func @transform_0(%arg0: i32) -> (i32, i32) {
    %c0_i32 = arith.constant 0 : i32
    %c0_i32_0 = arith.constant 0 : i32
    return %arg0, %c0_i32 : i32, i32
  }
  func.func @transform_1(%arg0: i32) -> (i32, i32) {
    %c0_i32 = arith.constant 0 : i32
    %c0_i32_0 = arith.constant 0 : i32
    %c0_i32_1 = arith.constant 0 : i32
    return %c0_i32, %c0_i32_0 : i32, i32
  }
  func.func @transform_2(%arg0: i32) -> (i32, i32) {
    %c0_i32 = arith.constant 0 : i32
    %c0_i32_0 = arith.constant 0 : i32
    %c0_i32_1 = arith.constant 0 : i32
    return %c0_i32, %c0_i32_0 : i32, i32
  }
  func.func @transform_3(%arg0: i32) -> (i32, i32) {
    %c0_i32 = arith.constant 0 : i32
    %c0_i32_0 = arith.constant 0 : i32
    %c0_i32_1 = arith.constant 0 : i32
    return %c0_i32, %c0_i32_0 : i32, i32
  }
  func.func @transform_4(%arg0: i32) -> (i32, i32) {
    %c0_i32 = arith.constant 0 : i32
    %c0_i32_0 = arith.constant 0 : i32
    %c0_i32_1 = arith.constant 0 : i32
    return %c0_i32, %c0_i32_0 : i32, i32
  }
  func.func @transform_5(%arg0: i32) -> (i32, i32) {
    %c0_i32 = arith.constant 0 : i32
    %c0_i32_0 = arith.constant 0 : i32
    return %arg0, %c0_i32 : i32, i32
  }
  func.func @transform_6(%arg0: i32) -> (i32, i32) {
    %c0_i32 = arith.constant 0 : i32
    %c0_i32_0 = arith.constant 0 : i32
    return %arg0, %c0_i32 : i32, i32
  }
}

</mosaic_0001>

<bundles_post_ra>
// kernel: tpu_custom_call.1
= control target key start
LH: loop header
LB: loop body
LE: loop exit
PB: predicated region body
PF: predicated region fallthrough
CT: control target
= control target key end

     0   :  { %12 = vsyncpa [#allocation3], 0  ;;  %s585_s0 = inlined_call_operand.hbm [shape: f32[8,32], index: 0, kind: input, shape index: {}]   ;;  %s586_s1 = inlined_call_operand.hbm [shape: bf16[32,128], index: 1, kind: input, shape index: {}]   ;;  %s587_s2 = inlined_call_operand.vmem [shape: f32[1,128], index: 2, kind: input, shape index: {}]   ;;  %s588_s3 = inlined_call_operand.hbm [shape: bf16[128,128], index: 3, kind: input, shape index: {}]   ;;  %s589_s4 = inlined_call_operand.vmem [shape: f32[1,128], index: 4, kind: input, shape index: {}]   ;;  %s590_s5 = inlined_call_operand.hbm [shape: f32[8,16], index: 5, kind: output, shape index: {0}]   ;;  %s591_s6 = inlined_call_operand.hbm [shape: f32[8,64], index: 6, kind: output, shape index: {1}]  }
   0x1   :  { %13 = vsyncpa [#allocation6], 0 }
   0x2   :  { %14 = vsyncpa [#allocation4], 0 }
   0x3   :  { %15 = vsyncpa [#allocation10], 0  ;;  %s469_s21 = smov [#allocation5]   ;;  %s351_s25 = scalar_lea.hbm %s586_s1, 256 }
   0x4   :  { %s31_s22 = sshll.u32 %s469_s21, 4  ;;  %p352_p0 = scmp.ne.s32.totalorder %s586_s1, %s351_s25  ;;  %s32_s22 = int_to_ptr.vmem [resolvable:$true] %s31_s22 }
   0x5   :  { %p355_p1 = scmp.lt.u32.totalorder %s351_s25, %s586_s1 }
   0x7   :  { %p357_p2 = pnand %p355_p1, %p352_p0 }
   0x9   :  { %360 = shalt.err (!%p357_p2)
}
   0xa   :  { %s361_s30 = scalar_lea.vmem %s32_s22, 256  ;;  %p366_p4 = scmp.lt.s32.totalorder %s32_s22, %s32_s22 }
   0xb   :  { %p362_p3 = scmp.ne.s32.totalorder %s32_s22, %s361_s30  ;;  %p367_p5 = scmp.lt.s32.totalorder %s361_s30, %s361_s30 }
   0xd   :  { %p368_p6 = por %p367_p5, %p366_p4 }
   0xf   :  { %p369_p7 = pnand %p368_p6, %p362_p3 }
  0x11   :  { %372 = shalt.err (!%p369_p7)
}
  0x12   :  { %s470_s7 = smov 64   ;;  %s471_s8 = smov 4  }
  0x13   :  { %37 = dma.hbm_to_vmem [thread:$0]  %s586_s1, 256, %s32_s22, [#allocation6], %s470_s7, %s470_s7, %s471_s8  }
  0x14   :  { %s472_s11 = smov [#allocation2]   ;;  %s473_s13 = smov [#allocation7]  }
  0x15   :  { %s22_s12 = sshll.u32 %s472_s11, 4  ;;  %s45_s14 = sshll.u32 %s473_s13, 4  ;;  %s23_s12 = int_to_ptr.vmem [resolvable:$true] %s22_s12  ;;  %s46_s14 = int_to_ptr.vmem [resolvable:$true] %s45_s14 }
  0x16   :  { %s373_s17 = scalar_lea.hbm %s585_s0, 128 }
  0x17   :  { %p374_p8 = scmp.ne.s32.totalorder %s585_s0, %s373_s17  ;;  %p377_p9 = scmp.lt.u32.totalorder %s373_s17, %s585_s0 }
  0x19   :  { %p379_p10 = pnand %p377_p9, %p374_p8 }
  0x1b   :  { %382 = shalt.err (!%p379_p10)
}
  0x1c   :  { %s383_s1 = scalar_lea.vmem %s23_s12, 128  ;;  %p388_p12 = scmp.lt.s32.totalorder %s23_s12, %s23_s12 }
  0x1d   :  { %p384_p11 = scmp.ne.s32.totalorder %s23_s12, %s383_s1  ;;  %p389_p13 = scmp.lt.s32.totalorder %s383_s1, %s383_s1 }
  0x1f   :  { %p390_p0 = por %p389_p13, %p388_p12 }
  0x21   :  { %p391_p1 = pnand %p390_p0, %p384_p11 }
  0x23   :  { %394 = shalt.err (!%p391_p1)
}
  0x24   :  { %25 = dma.hbm_to_vmem [thread:$0]  %s585_s0, 128, %s23_s12, [#allocation3]  }
  0x25   :  { %s395_s26 = scalar_lea.hbm %s588_s3, 1024 }
  0x26   :  { %p396_p2 = scmp.ne.s32.totalorder %s588_s3, %s395_s26  ;;  %p399_p3 = scmp.lt.u32.totalorder %s395_s26, %s588_s3 }
  0x28   :  { %p401_p4 = pnand %p399_p3, %p396_p2 }
  0x2a   :  { %404 = shalt.err (!%p401_p4)
}
  0x2b   :  { %s405_s9 = scalar_lea.vmem %s46_s14, 1024  ;;  %p410_p6 = scmp.lt.s32.totalorder %s46_s14, %s46_s14 }
  0x2c   :  { %p406_p5 = scmp.ne.s32.totalorder %s46_s14, %s405_s9  ;;  %p411_p7 = scmp.lt.s32.totalorder %s405_s9, %s405_s9 }
  0x2e   :  { %p412_p8 = por %p411_p7, %p410_p6 }
  0x30   :  { %p413_p9 = pnand %p412_p8, %p406_p5 }
  0x32   :  { %416 = shalt.err (!%p413_p9)
}
  0x33   :  { %51 = dma.hbm_to_vmem [thread:$0]  %s588_s3, 1024, %s46_s14, [#allocation6], %s470_s7, %s470_s7, %s471_s8  }
  0x34   :  { %461 = dma.done.wait [#allocation3], 128  }
  0x35   :  { %462 = vsyncadd [#allocation3], 4294967168 }
  0x36   :  { %463 = dma.done.wait [#allocation6], 1280  }
  0x37   :  { %464 = vsyncadd [#allocation6], 4294966016  ;;  %v474_v0 = vmov 0.0   ;;  %vm475_vm0 = vmmov 0   ;;  %v341_v1 = vld [vmem:[#allocation5] sm:$0xff]   ;;  %v342_v2 = vld [vmem:[#allocation5 + $0x8] sm:$0xff]  }
  0x38   :  { %304 = vmatprep.subr.bf16.mxu0 %v474_v0  ;;  %308 = vmatprep.mubr.msk.bf16.mxu0 %vm475_vm0, %v474_v0  ;;  %v64_v3 = vld [vmem:[#allocation2] sm:$0xff]  ;;  %v343_v4 = vld [vmem:[#allocation7] sm:$0xff]   ;;  %vm89_vm1 = vcmask 261120   ;;  %v345_v7 = vld [vmem:[#allocation7 + $0x10] sm:$0xff]   ;;  %vm247_vm2 = vcmask 523264   ;;  %s476_s8 = smov [#allocation9]  }
  0x39   :  { %312 = vmatprep.subr.bf16.mxu1 %v474_v0  ;;  %328 = vmatprep.mubr.msk.bf16.mxu1 %vm475_vm0, %v474_v0  ;;  %v65_v5 = vpack.c.bf16 %v64_v3, %v64_v3  ;;  %v344_v6 = vld [vmem:[#allocation7 + $0x8] sm:$0xff]   ;;  %v346_v8 = vld [vmem:[#allocation7 + $0x18] sm:$0xff]   ;;  %v347_v9 = vld [vmem:[#allocation7 + $0x20] sm:$0xff]   ;;  %s265_s11 = sshll.u32 %s476_s8, 4  ;;  %s266_s11 = int_to_ptr.vmem [resolvable:$true] %s265_s11 }
  0x3a   :  { %305 = vmatpush3.bf16.msra.mxu0 %v341_v1  ;;  %313 = vmatpush3.bf16.msra.mxu1 %v343_v4  ;;  %v348_v10 = vld [vmem:[#allocation7 + $0x28] sm:$0xff]   ;;  %v349_v11 = vld [vmem:[#allocation7 + $0x30] sm:$0xff]   ;;  %v350_v12 = vld [vmem:[#allocation7 + $0x38] sm:$0xff]   ;;  %s417_s12 = scalar_lea.vmem %s266_s11, 128  ;;  %p422_p11 = scmp.lt.s32.totalorder %s266_s11, %s266_s11 }
  0x3b   :  { %306 = vmatprep.subr.bf16.mxu0 %v474_v0  ;;  %314 = vmatprep.subr.bf16.mxu1 %v474_v0  ;;  %v279_v13 = vld [vmem:[%s587_s2] ss:$0 sm:$0xff]  ;;  %p418_p10 = scmp.ne.s32.totalorder %s266_s11, %s417_s12  ;;  %p423_p12 = scmp.lt.s32.totalorder %s417_s12, %s417_s12 }
  0x3d   :  { %p424_p13 = por %p423_p12, %p422_p11 }
  0x3e   :  { %307 = vmatpush3.bf16.msra.mxu0 %v342_v2  ;;  %315 = vmatpush3.bf16.msra.mxu1 %v344_v6 }
  0x3f   :  { %316 = vmatprep.subr.bf16.mxu1 %v474_v0  ;;  %p425_p0 = pnand %p424_p13, %p418_p10 }
  0x41   :  { %309 = vmatmul.mubr.msk.bf16.vlgmr.msra.gmra.mrb[0].mxu0 %vm89_vm1, %v65_v5 }
  0x42   :  { %317 = vmatpush3.bf16.msra.mxu1 %v345_v7 }
  0x43   :  { %318 = vmatprep.subr.bf16.mxu1 %v474_v0 }
  0x46   :  { %319 = vmatpush3.bf16.msra.mxu1 %v346_v8 }
  0x47   :  { %320 = vmatprep.subr.bf16.mxu1 %v474_v0 }
  0x4a   :  { %321 = vmatpush3.bf16.msra.mxu1 %v347_v9 }
  0x4b   :  { %322 = vmatprep.subr.bf16.mxu1 %v474_v0 }
  0x4e   :  { %323 = vmatpush3.bf16.msra.mxu1 %v348_v10 }
  0x4f   :  { %324 = vmatprep.subr.bf16.mxu1 %v474_v0 }
  0x52   :  { %325 = vmatpush3.bf16.msra.mxu1 %v349_v11 }
  0x53   :  { %326 = vmatprep.subr.bf16.mxu1 %v474_v0 }
  0x56   :  { %327 = vmatpush3.bf16.msra.mxu1 %v350_v12 }
 0x114   :  { %v127_v14 = vpop.f32.mrb[0].mxu0 }
 0x115   :  { %v128_v15 = vadd.f32 %v279_v13, %v127_v14  ;;  %v310_v16 = vpop.f32.mrb[1].mxu0 }
 0x116   :  { %v130_v17 = vpop.f32.mrb[2].mxu0 }
 0x117   :  { %v133_v18 = vpack.c.bf16 %v128_v15, %v128_v15  ;;  %v311_v19 = vpop.f32.mrb[3].mxu0  ;;  %248 = vst.msk [vmem:[#allocation9] sm:$0xff] %vm247_vm2, %v128_v15 }
 0x119   :  { %329 = vmatmul.mubr.bf16.vlgmr.msra.gmra.mrb[0].mxu1 %v133_v18 }
 0x11a   :  { %428 = shalt.err (!%p425_p0)
}
 0x11b   :  { %s429_s14 = scalar_lea.hbm %s591_s6, 128 }
 0x11c   :  { %p430_p1 = scmp.ne.s32.totalorder %s591_s6, %s429_s14  ;;  %p433_p2 = scmp.lt.u32.totalorder %s429_s14, %s591_s6 }
 0x11e   :  { %p435_p3 = pnand %p433_p2, %p430_p1 }
 0x120   :  { %438 = shalt.err (!%p435_p3)
}
 0x121   :  { %268 = dma.vmem_to_hbm [thread:$0]  %s266_s11, 128, %s591_s6, [#allocation10]   ;;  %v283_v20 = vld [vmem:[%s589_s4] ss:$0 sm:$0xff]  ;;  %vm245_vm3 = vcmask 130048  }
 0x122   :  { %s477_s22 = smov [#allocation8]  }
 0x123   :  { %s255_s23 = sshll.u32 %s477_s22, 4  ;;  %s256_s23 = int_to_ptr.vmem [resolvable:$true] %s255_s23 }
 0x124   :  { %s439_s24 = scalar_lea.vmem %s256_s23, 128  ;;  %p444_p5 = scmp.lt.s32.totalorder %s256_s23, %s256_s23 }
 0x125   :  { %p440_p4 = scmp.ne.s32.totalorder %s256_s23, %s439_s24  ;;  %p445_p6 = scmp.lt.s32.totalorder %s439_s24, %s439_s24 }
 0x127   :  { %p446_p7 = por %p445_p6, %p444_p5 }
 0x129   :  { %p447_p8 = pnand %p446_p7, %p440_p4 }
 0x1ec   :  { %v239_v21 = vpop.f32.mrb[0].mxu1 }
 0x1ed   :  { %v240_v22 = vadd.f32 %v283_v20, %v239_v21  ;;  %v330_v23 = vpop.f32.mrb[1].mxu1 }
 0x1ee   :  { %v242_v24 = vpop.f32.mrb[2].mxu1 }
 0x1ef   :  { %v331_v25 = vpop.f32.mrb[3].mxu1  ;;  %246 = vst.msk [vmem:[#allocation8] sm:$0xff] %vm245_vm3, %v240_v22 }
 0x1f0   :  { %450 = shalt.err (!%p447_p8)
}
 0x1f1   :  { %s451_s4 = scalar_lea.hbm %s590_s5, 128 }
 0x1f2   :  { %p452_p9 = scmp.ne.s32.totalorder %s590_s5, %s451_s4  ;;  %p455_p10 = scmp.lt.u32.totalorder %s451_s4, %s590_s5 }
 0x1f4   :  { %p457_p11 = pnand %p455_p10, %p452_p9 }
 0x1f6   :  { %460 = shalt.err (!%p457_p11)
}
 0x1f7   :  { %258 = dma.vmem_to_hbm [thread:$0]  %s256_s23, 128, %s590_s5, [#allocation4]  }
 0x1f8   :  { %465 = dma.done.wait [#allocation4], 128  }
 0x1f9   :  { %466 = vsyncadd [#allocation4], 4294967168 }
 0x1fa   :  { %467 = dma.done.wait [#allocation10], 128  }
 0x1fb   :  { %468 = vsyncadd [#allocation10], 4294967168 }
 0x1fc   :  { %275 = vsyncpa [#allocation3], 1 }
 0x1fd   :  { %276 = vsyncpa [#allocation6], 1 }
 0x1fe   :  { %277 = vsyncpa [#allocation4], 1 }
 0x1ff   :  { %278 = vsyncpa [#allocation10], 1 }

// kernel: tpu_custom_call.1
= control target key start
LH: loop header
LB: loop body
LE: loop exit
PB: predicated region body
PF: predicated region fallthrough
CT: control target
= control target key end

     0   :  { %12 = vsyncpa [#allocation3], 0  ;;  %s585_s0 = inlined_call_operand.hbm [shape: f32[8,32], index: 0, kind: input, shape index: {}]   ;;  %s586_s1 = inlined_call_operand.hbm [shape: bf16[32,128], index: 1, kind: input, shape index: {}]   ;;  %s587_s2 = inlined_call_operand.vmem [shape: f32[1,128], index: 2, kind: input, shape index: {}]   ;;  %s588_s3 = inlined_call_operand.hbm [shape: bf16[128,128], index: 3, kind: input, shape index: {}]   ;;  %s589_s4 = inlined_call_operand.vmem [shape: f32[1,128], index: 4, kind: input, shape index: {}]   ;;  %s590_s5 = inlined_call_operand.hbm [shape: f32[8,16], index: 5, kind: output, shape index: {0}]   ;;  %s591_s6 = inlined_call_operand.hbm [shape: f32[8,64], index: 6, kind: output, shape index: {1}]  }
   0x1   :  { %13 = vsyncpa [#allocation6], 0 }
   0x2   :  { %14 = vsyncpa [#allocation4], 0 }
   0x3   :  { %15 = vsyncpa [#allocation10], 0  ;;  %s469_s21 = smov [#allocation5]   ;;  %s351_s25 = scalar_lea.hbm %s586_s1, 256 }
   0x4   :  { %s31_s22 = sshll.u32 %s469_s21, 4  ;;  %p352_p0 = scmp.ne.s32.totalorder %s586_s1, %s351_s25  ;;  %s32_s22 = int_to_ptr.vmem [resolvable:$true] %s31_s22 }
   0x5   :  { %p355_p1 = scmp.lt.u32.totalorder %s351_s25, %s586_s1 }
   0x7   :  { %p357_p2 = pnand %p355_p1, %p352_p0 }
   0x9   :  { %360 = shalt.err (!%p357_p2)
}
   0xa   :  { %s361_s30 = scalar_lea.vmem %s32_s22, 256  ;;  %p366_p4 = scmp.lt.s32.totalorder %s32_s22, %s32_s22 }
   0xb   :  { %p362_p3 = scmp.ne.s32.totalorder %s32_s22, %s361_s30  ;;  %p367_p5 = scmp.lt.s32.totalorder %s361_s30, %s361_s30 }
   0xd   :  { %p368_p6 = por %p367_p5, %p366_p4 }
   0xf   :  { %p369_p7 = pnand %p368_p6, %p362_p3 }
  0x11   :  { %372 = shalt.err (!%p369_p7)
}
  0x12   :  { %s470_s7 = smov 64   ;;  %s471_s8 = smov 4  }
  0x13   :  { %37 = dma.hbm_to_vmem [thread:$0]  %s586_s1, 256, %s32_s22, [#allocation6], %s470_s7, %s470_s7, %s471_s8  }
  0x14   :  { %s472_s11 = smov [#allocation2]   ;;  %s473_s13 = smov [#allocation7]  }
  0x15   :  { %s22_s12 = sshll.u32 %s472_s11, 4  ;;  %s45_s14 = sshll.u32 %s473_s13, 4  ;;  %s23_s12 = int_to_ptr.vmem [resolvable:$true] %s22_s12  ;;  %s46_s14 = int_to_ptr.vmem [resolvable:$true] %s45_s14 }
  0x16   :  { %s373_s17 = scalar_lea.hbm %s585_s0, 128 }
  0x17   :  { %p374_p8 = scmp.ne.s32.totalorder %s585_s0, %s373_s17  ;;  %p377_p9 = scmp.lt.u32.totalorder %s373_s17, %s585_s0 }
  0x19   :  { %p379_p10 = pnand %p377_p9, %p374_p8 }
  0x1b   :  { %382 = shalt.err (!%p379_p10)
}
  0x1c   :  { %s383_s1 = scalar_lea.vmem %s23_s12, 128  ;;  %p388_p12 = scmp.lt.s32.totalorder %s23_s12, %s23_s12 }
  0x1d   :  { %p384_p11 = scmp.ne.s32.totalorder %s23_s12, %s383_s1  ;;  %p389_p13 = scmp.lt.s32.totalorder %s383_s1, %s383_s1 }
  0x1f   :  { %p390_p0 = por %p389_p13, %p388_p12 }
  0x21   :  { %p391_p1 = pnand %p390_p0, %p384_p11 }
  0x23   :  { %394 = shalt.err (!%p391_p1)
}
  0x24   :  { %25 = dma.hbm_to_vmem [thread:$0]  %s585_s0, 128, %s23_s12, [#allocation3]  }
  0x25   :  { %s395_s26 = scalar_lea.hbm %s588_s3, 1024 }
  0x26   :  { %p396_p2 = scmp.ne.s32.totalorder %s588_s3, %s395_s26  ;;  %p399_p3 = scmp.lt.u32.totalorder %s395_s26, %s588_s3 }
  0x28   :  { %p401_p4 = pnand %p399_p3, %p396_p2 }
  0x2a   :  { %404 = shalt.err (!%p401_p4)
}
  0x2b   :  { %s405_s9 = scalar_lea.vmem %s46_s14, 1024  ;;  %p410_p6 = scmp.lt.s32.totalorder %s46_s14, %s46_s14 }
  0x2c   :  { %p406_p5 = scmp.ne.s32.totalorder %s46_s14, %s405_s9  ;;  %p411_p7 = scmp.lt.s32.totalorder %s405_s9, %s405_s9 }
  0x2e   :  { %p412_p8 = por %p411_p7, %p410_p6 }
  0x30   :  { %p413_p9 = pnand %p412_p8, %p406_p5 }
  0x32   :  { %416 = shalt.err (!%p413_p9)
}
  0x33   :  { %51 = dma.hbm_to_vmem [thread:$0]  %s588_s3, 1024, %s46_s14, [#allocation6], %s470_s7, %s470_s7, %s471_s8  }
  0x34   :  { %461 = dma.done.wait [#allocation3], 128  }
  0x35   :  { %462 = vsyncadd [#allocation3], 4294967168 }
  0x36   :  { %463 = dma.done.wait [#allocation6], 1280  }
  0x37   :  { %464 = vsyncadd [#allocation6], 4294966016  ;;  %v474_v0 = vmov 0.0   ;;  %vm475_vm0 = vmmov 0   ;;  %v341_v1 = vld [vmem:[#allocation5] sm:$0xff]   ;;  %v342_v2 = vld [vmem:[#allocation5 + $0x8] sm:$0xff]  }
  0x38   :  { %304 = vmatprep.subr.bf16.mxu0 %v474_v0  ;;  %308 = vmatprep.mubr.msk.bf16.mxu0 %vm475_vm0, %v474_v0  ;;  %v64_v3 = vld [vmem:[#allocation2] sm:$0xff]  ;;  %v343_v4 = vld [vmem:[#allocation7] sm:$0xff]   ;;  %vm89_vm1 = vcmask 261120   ;;  %v345_v7 = vld [vmem:[#allocation7 + $0x10] sm:$0xff]   ;;  %vm247_vm2 = vcmask 523264   ;;  %s476_s8 = smov [#allocation9]  }
  0x39   :  { %312 = vmatprep.subr.bf16.mxu1 %v474_v0  ;;  %328 = vmatprep.mubr.msk.bf16.mxu1 %vm475_vm0, %v474_v0  ;;  %v65_v5 = vpack.c.bf16 %v64_v3, %v64_v3  ;;  %v344_v6 = vld [vmem:[#allocation7 + $0x8] sm:$0xff]   ;;  %v346_v8 = vld [vmem:[#allocation7 + $0x18] sm:$0xff]   ;;  %v347_v9 = vld [vmem:[#allocation7 + $0x20] sm:$0xff]   ;;  %s265_s11 = sshll.u32 %s476_s8, 4  ;;  %s266_s11 = int_to_ptr.vmem [resolvable:$true] %s265_s11 }
  0x3a   :  { %305 = vmatpush3.bf16.msra.mxu0 %v341_v1  ;;  %313 = vmatpush3.bf16.msra.mxu1 %v343_v4  ;;  %v348_v10 = vld [vmem:[#allocation7 + $0x28] sm:$0xff]   ;;  %v349_v11 = vld [vmem:[#allocation7 + $0x30] sm:$0xff]   ;;  %v350_v12 = vld [vmem:[#allocation7 + $0x38] sm:$0xff]   ;;  %s417_s12 = scalar_lea.vmem %s266_s11, 128  ;;  %p422_p11 = scmp.lt.s32.totalorder %s266_s11, %s266_s11 }
  0x3b   :  { %306 = vmatprep.subr.bf16.mxu0 %v474_v0  ;;  %314 = vmatprep.subr.bf16.mxu1 %v474_v0  ;;  %v279_v13 = vld [vmem:[%s587_s2] ss:$0 sm:$0xff]  ;;  %p418_p10 = scmp.ne.s32.totalorder %s266_s11, %s417_s12  ;;  %p423_p12 = scmp.lt.s32.totalorder %s417_s12, %s417_s12 }
  0x3d   :  { %p424_p13 = por %p423_p12, %p422_p11 }
  0x3e   :  { %307 = vmatpush3.bf16.msra.mxu0 %v342_v2  ;;  %315 = vmatpush3.bf16.msra.mxu1 %v344_v6 }
  0x3f   :  { %316 = vmatprep.subr.bf16.mxu1 %v474_v0  ;;  %p425_p0 = pnand %p424_p13, %p418_p10 }
  0x41   :  { %309 = vmatmul.mubr.msk.bf16.vlgmr.msra.gmra.mrb[0].mxu0 %vm89_vm1, %v65_v5 }
  0x42   :  { %317 = vmatpush3.bf16.msra.mxu1 %v345_v7 }
  0x43   :  { %318 = vmatprep.subr.bf16.mxu1 %v474_v0 }
  0x46   :  { %319 = vmatpush3.bf16.msra.mxu1 %v346_v8 }
  0x47   :  { %320 = vmatprep.subr.bf16.mxu1 %v474_v0 }
  0x4a   :  { %321 = vmatpush3.bf16.msra.mxu1 %v347_v9 }
  0x4b   :  { %322 = vmatprep.subr.bf16.mxu1 %v474_v0 }
  0x4e   :  { %323 = vmatpush3.bf16.msra.mxu1 %v348_v10 }
  0x4f   :  { %324 = vmatprep.subr.bf16.mxu1 %v474_v0 }
  0x52   :  { %325 = vmatpush3.bf16.msra.mxu1 %v349_v11 }
  0x53   :  { %326 = vmatprep.subr.bf16.mxu1 %v474_v0 }
  0x56   :  { %327 = vmatpush3.bf16.msra.mxu1 %v350_v12 }
 0x114   :  { %v127_v14 = vpop.f32.mrb[0].mxu0 }
 0x115   :  { %v128_v15 = vadd.f32 %v279_v13, %v127_v14  ;;  %v310_v16 = vpop.f32.mrb[1].mxu0 }
 0x116   :  { %v130_v17 = vpop.f32.mrb[2].mxu0 }
 0x117   :  { %v133_v18 = vpack.c.bf16 %v128_v15, %v128_v15  ;;  %v311_v19 = vpop.f32.mrb[3].mxu0  ;;  %248 = vst.msk [vmem:[#allocation9] sm:$0xff] %vm247_vm2, %v128_v15 }
 0x119   :  { %329 = vmatmul.mubr.bf16.vlgmr.msra.gmra.mrb[0].mxu1 %v133_v18 }
 0x11a   :  { %428 = shalt.err (!%p425_p0)
}
 0x11b   :  { %s429_s14 = scalar_lea.hbm %s591_s6, 128 }
 0x11c   :  { %p430_p1 = scmp.ne.s32.totalorder %s591_s6, %s429_s14  ;;  %p433_p2 = scmp.lt.u32.totalorder %s429_s14, %s591_s6 }
 0x11e   :  { %p435_p3 = pnand %p433_p2, %p430_p1 }
 0x120   :  { %438 = shalt.err (!%p435_p3)
}
 0x121   :  { %268 = dma.vmem_to_hbm [thread:$0]  %s266_s11, 128, %s591_s6, [#allocation10]   ;;  %v283_v20 = vld [vmem:[%s589_s4] ss:$0 sm:$0xff]  ;;  %vm245_vm3 = vcmask 130048  }
 0x122   :  { %s477_s22 = smov [#allocation8]  }
 0x123   :  { %s255_s23 = sshll.u32 %s477_s22, 4  ;;  %s256_s23 = int_to_ptr.vmem [resolvable:$true] %s255_s23 }
 0x124   :  { %s439_s24 = scalar_lea.vmem %s256_s23, 128  ;;  %p444_p5 = scmp.lt.s32.totalorder %s256_s23, %s256_s23 }
 0x125   :  { %p440_p4 = scmp.ne.s32.totalorder %s256_s23, %s439_s24  ;;  %p445_p6 = scmp.lt.s32.totalorder %s439_s24, %s439_s24 }
 0x127   :  { %p446_p7 = por %p445_p6, %p444_p5 }
 0x129   :  { %p447_p8 = pnand %p446_p7, %p440_p4 }
 0x1ec   :  { %v239_v21 = vpop.f32.mrb[0].mxu1 }
 0x1ed   :  { %v240_v22 = vadd.f32 %v283_v20, %v239_v21  ;;  %v330_v23 = vpop.f32.mrb[1].mxu1 }
 0x1ee   :  { %v242_v24 = vpop.f32.mrb[2].mxu1 }
 0x1ef   :  { %v331_v25 = vpop.f32.mrb[3].mxu1  ;;  %246 = vst.msk [vmem:[#allocation8] sm:$0xff] %vm245_vm3, %v240_v22 }
 0x1f0   :  { %450 = shalt.err (!%p447_p8)
}
 0x1f1   :  { %s451_s4 = scalar_lea.hbm %s590_s5, 128 }
 0x1f2   :  { %p452_p9 = scmp.ne.s32.totalorder %s590_s5, %s451_s4  ;;  %p455_p10 = scmp.lt.u32.totalorder %s451_s4, %s590_s5 }
 0x1f4   :  { %p457_p11 = pnand %p455_p10, %p452_p9 }
 0x1f6   :  { %460 = shalt.err (!%p457_p11)
}
 0x1f7   :  { %258 = dma.vmem_to_hbm [thread:$0]  %s256_s23, 128, %s590_s5, [#allocation4]  }
 0x1f8   :  { %465 = dma.done.wait [#allocation4], 128  }
 0x1f9   :  { %466 = vsyncadd [#allocation4], 4294967168 }
 0x1fa   :  { %467 = dma.done.wait [#allocation10], 128  }
 0x1fb   :  { %468 = vsyncadd [#allocation10], 4294967168 }
 0x1fc   :  { %275 = vsyncpa [#allocation3], 1 }
 0x1fd   :  { %276 = vsyncpa [#allocation6], 1 }
 0x1fe   :  { %277 = vsyncpa [#allocation4], 1 }
 0x1ff   :  { %278 = vsyncpa [#allocation10], 1 }

</bundles_post_ra>
